<compile_context>
chip_gen: v6e
topology: v6e:2x2x1
jax: 0.10.0
libtpu: 0.0.40
codegen_flags: <defaults>
</compile_context>

<pallas_src>
import functools

import jax
import jax.numpy as jnp
from jax import lax
from jax.experimental import pallas as pl
from jax.experimental.pallas import tpu as pltpu

LANES = 128
SUBLANES = 8
VREG = SUBLANES * LANES          # 1024 elements
MAX_TILE_ROWS = 8192             # 8192x128 f32 = 4 MiB/block -> 8 MiB double-buffered
CHUNK_ROWS = 2048                # in-kernel sub-chunk bounds f32 upcast temporaries


def _sumsq_kernel(g_ref, out_ref, *, valid_rows, tile_rows, chunk_rows, mask_last):
    """Streaming sum-of-squares of one gradient leaf.

    g_ref   : (tile_rows, 128) tile of the lane-dense gradient view (any float dtype).
    out_ref : (8, 128) f32 partial sum of squares, resident across the grid.
    """
    i = pl.program_id(0)

    @pl.when(i == 0)
    def _():
        out_ref[...] = jnp.zeros_like(out_ref)

    block_row0 = i * tile_rows

    def chunk_sumsq(start, nrows):
        g = g_ref[pl.ds(start, nrows), :].astype(jnp.float32)
        sq = g * g
        if mask_last:
            # The last grid block may be partial; rows past `valid_rows` hold
            # unspecified VMEM contents -> select them away before reducing.
            row_idx = (block_row0 + start
                       + lax.broadcasted_iota(jnp.int32, (nrows, 1), 0))
            sq = jnp.where(row_idx < valid_rows, sq, 0.0)
        # Fold rows into an (8, 128) vreg-shaped partial: pure VPU adds, no
        # cross-lane XLU work on the hot path.
        return jnp.sum(sq.reshape(-1, SUBLANES, LANES), axis=0)

    n_full = tile_rows // chunk_rows
    rem = tile_rows % chunk_rows      # multiple of 8 by construction

    acc = jnp.zeros((SUBLANES, LANES), jnp.float32)
    if n_full > 0:
        def body(c, a):
            start = pl.multiple_of(c * chunk_rows, SUBLANES)
            return a + chunk_sumsq(start, chunk_rows)
        acc = lax.fori_loop(0, n_full, body, acc, unroll=True)
    if rem > 0:
        acc = acc + chunk_sumsq(n_full * chunk_rows, rem)

    out_ref[...] += acc


def _leaf_sum_of_squares(leaf):
    """sum(leaf**2) in f32, streaming the leaf (in its own dtype) through Pallas."""
    flat = jnp.ravel(leaf)
    n = int(flat.shape[0])
    n_main = (n // VREG) * VREG
    total = None

    if n_main > 0:
        rows = n_main // LANES                                   # multiple of 8
        main = flat[:n_main].reshape(rows, LANES)                # lane-dense view
        tile_rows = min(MAX_TILE_ROWS, rows)
        chunk_rows = min(CHUNK_ROWS, tile_rows)
        num_tiles = pl.cdiv(rows, tile_rows)
        partial = pl.pallas_call(
            functools.partial(
                _sumsq_kernel,
                valid_rows=rows,
                tile_rows=tile_rows,
                chunk_rows=chunk_rows,
                mask_last=(rows % tile_rows != 0),
            ),
            out_shape=jax.ShapeDtypeStruct((SUBLANES, LANES), jnp.float32),
            grid_spec=pltpu.PrefetchScalarGridSpec(
                num_scalar_prefetch=0,
                grid=(num_tiles,),
                in_specs=[pl.BlockSpec((tile_rows, LANES), lambda i: (i, 0))],
                out_specs=pl.BlockSpec((SUBLANES, LANES), lambda i: (0, 0)),
            ),
            compiler_params=pltpu.CompilerParams(
                dimension_semantics=("arbitrary",),
                vmem_limit_bytes=32 * 1024 * 1024,
            ),
        )(main)
        total = jnp.sum(partial)

    if n_main < n:
        # Ragged tail (< 1024 elements): negligible work, plain JAX.
        t = flat[n_main:].astype(jnp.float32)
        tail = jnp.sum(t * t)
        total = tail if total is None else total + tail

    return total if total is not None else jnp.zeros((), jnp.float32)


def _grads_sum_of_squares(grads):
    total = jnp.zeros((), jnp.float32)
    for leaf in jax.tree_util.tree_leaves(grads):
        total = total + _leaf_sum_of_squares(leaf)
    return total


def gradnorm_loss(contrastive_loss, mae_loss, grads_contrastive, grads_mae,
                  contrastive_weight, mae_weight,
                  initial_contrastive_loss, initial_mae_loss, alpha):
    # Hot path: two HBM-bound L2-norm reductions over the shared-param grads.
    ss1 = _grads_sum_of_squares(grads_contrastive)
    ss2 = _grads_sum_of_squares(grads_mae)

    w1 = jnp.asarray(contrastive_weight, jnp.float32).reshape(-1)[0]
    w2 = jnp.asarray(mae_weight, jnp.float32).reshape(-1)[0]

    # ||w * g||_2 == sqrt(w^2 * sum(g^2)): weight multiply hoisted off the hot loop.
    G1 = jnp.sqrt(ss1 * (w1 * w1))          # torch.norm(w_c * g_c, 2)
    G2 = jnp.sqrt(ss2 * (w2 * w2))          # torch.norm(w_mae * g_mae, 2)
    G_avg = G1 + G2                         # torch.mean over a 1-element tensor

    c_loss = jnp.asarray(contrastive_loss, jnp.float32).reshape(())
    m_loss = jnp.asarray(mae_loss, jnp.float32).reshape(())
    init_c = jnp.asarray(initial_contrastive_loss, jnp.float32).reshape(())
    init_m = jnp.asarray(initial_mae_loss, jnp.float32).reshape(())

    lhat1 = c_loss / init_c
    lhat2 = m_loss / init_m
    lhat_avg = lhat1 + lhat2                # torch.mean over a scalar
    inv_rate1 = lhat1 / lhat_avg
    inv_rate2 = lhat2 / lhat_avg

    # NOTE: like the PyTorch reference, NaN if any loss / initial loss is <= 0.
    C1 = G_avg * inv_rate1 ** alpha
    C2 = G_avg * inv_rate2 ** alpha

    # nn.L1Loss over 1-element tensors == abs diff; scalar epilogue stays in
    # plain JAX (a second pallas_call dispatch costs more than it saves).
    return jnp.abs(G1 - C1) + jnp.abs(G2 - C2)


def gradnorm_ref(contrastive_loss, mae_loss, grads_contrastive, grads_mae,
                 contrastive_weight, mae_weight,
                 initial_contrastive_loss, initial_mae_loss, alpha):
    """Pure-JAX reference mirroring the PyTorch forward exactly."""
    g1 = jnp.concatenate([jnp.ravel(g).astype(jnp.float32)
                          for g in jax.tree_util.tree_leaves(grads_contrastive)])
    g2 = jnp.concatenate([jnp.ravel(g).astype(jnp.float32)
                          for g in jax.tree_util.tree_leaves(grads_mae)])
    w1 = jnp.asarray(contrastive_weight, jnp.float32).reshape(-1)[0]
    w2 = jnp.asarray(mae_weight, jnp.float32).reshape(-1)[0]
    G1 = jnp.linalg.norm(w1 * g1)
    G2 = jnp.linalg.norm(w2 * g2)
    G_avg = G1 + G2
    lhat1 = contrastive_loss / initial_contrastive_loss
    lhat2 = mae_loss / initial_mae_loss
    lhat_avg = lhat1 + lhat2
    C1 = G_avg * (lhat1 / lhat_avg) ** alpha
    C2 = G_avg * (lhat2 / lhat_avg) ** alpha
    return jnp.abs(G1 - C1) + jnp.abs(G2 - C2)


if __name__ == "__main__":
    key = jax.random.PRNGKey(0)
    k1, k2, k3, k4, k5 = jax.random.split(key, 5)

    # Synthetic "shared parameters" (several leaves, including non-multiple-of-1024
    # sizes to exercise the ragged-tail path) and data so the two losses exist.
    params = {
        "w1": jax.random.normal(k1, (32, 64), jnp.float32) * 0.1,   # 2048  -> kernel only
        "w2": jax.random.normal(k2, (64, 40), jnp.float32) * 0.1,   # 2560  -> kernel + tail
        "b":  jax.random.normal(k3, (40,), jnp.float32) * 0.1,      # 40    -> tail only
    }
    x = jax.random.normal(k4, (4, 32), jnp.float32)
    y = jax.random.normal(k5, (4, 40), jnp.float32)

    def forward(p):
        return jnp.tanh(x @ p["w1"]) @ p["w2"] + p["b"]

    def contrastive_loss_fn(p):
        return jnp.mean(jnp.tanh(forward(p)) ** 2)

    def mae_loss_fn(p):
        return jnp.mean(jnp.abs(forward(p) - y))

    # torch.autograd.grad equivalent (plain JAX glue):
    c_loss, g_c = jax.value_and_grad(contrastive_loss_fn)(params)
    m_loss, g_m = jax.value_and_grad(mae_loss_fn)(params)

    # GradNorm module state (deterministic init, matching __init__):
    alpha = 1.5
    contrastive_weight = jnp.ones((1,), jnp.float32)          # nn.Parameter(torch.ones(1))
    mae_weight = jnp.ones((1,), jnp.float32)                  # nn.Parameter(torch.ones(1))
    initial_contrastive_loss = jnp.asarray(2.0, jnp.float32)  # pre-computed buffer
    initial_mae_loss = jnp.asarray(1.5, jnp.float32)          # pre-computed buffer

    out = gradnorm_loss(c_loss, m_loss, g_c, g_m,
                        contrastive_weight, mae_weight,
                        initial_contrastive_loss, initial_mae_loss, alpha)
    out = jax.block_until_ready(out)

    ref = gradnorm_ref(c_loss, m_loss, g_c, g_m,
                       contrastive_weight, mae_weight,
                       initial_contrastive_loss, initial_mae_loss, alpha)

    assert jnp.isfinite(out), "kernel produced non-finite output"
    assert jnp.allclose(out, ref, rtol=1e-4, atol=1e-5), (out, ref)
    print("KERNEL_OK")
</pallas_src>

<mosaic_0001>
module attributes {stable_mosaic.version = 11 : i64} {
  func.func @_sumsq_kernel(%arg0: i32, %arg1: memref<16x128xf32, #tpu.memory_space<vmem>>, %arg2: memref<8x128xf32, #tpu.memory_space<vmem>>) attributes {dimension_semantics = [#tpu.dimension_semantics<arbitrary>], iteration_bounds = array<i64: 1>, scalar_prefetch = 0 : i64, scratch_operands = 0 : i64, tpu.core_type = #tpu.core_type<tc>, window_params = [{transform_indices = @transform_0, window_bounds = array<i64: 16, 128>}, {pipeline_mode = #tpu.pipeline_mode<synchronous>, transform_indices = @transform_1, window_bounds = array<i64: 8, 128>}]} {
    %c0_i32 = arith.constant 0 : i32
    %0 = arith.cmpi eq, %arg0, %c0_i32 : i32
    %1 = arith.extui %0 : i1 to i32
    %c0_i32_0 = arith.constant 0 : i32
    %2 = arith.cmpi ne, %1, %c0_i32_0 : i32
    scf.if %2 {
      %cst_7 = arith.constant 0.000000e+00 : f32
      %15 = vector.broadcast %cst_7 : f32 to vector<8x128xf32>
      %c0_8 = arith.constant 0 : index
      %c0_9 = arith.constant 0 : index
      %16 = vector.load %arg2[%c0_8, %c0_9] : memref<8x128xf32, #tpu.memory_space<vmem>>, vector<8x128xf32>
      tpu.vector_store %arg2[%c0_8, %c0_9], %15 {strides = array<i32>} : memref<8x128xf32, #tpu.memory_space<vmem>>, vector<8x128xf32>,
    } else {
    }
    %cst = arith.constant 0.000000e+00 : f32
    %3 = vector.broadcast %cst : f32 to vector<8x128xf32>
    %c0_i32_1 = arith.constant 0 : i32
    %c16_i32 = arith.constant 16 : i32
    %4 = arith.muli %c0_i32_1, %c16_i32 : i32
    %5 = tpu.assume_multiple %4, 8 : i32
    %6 = arith.index_cast %5 : i32 to index
    %c0 = arith.constant 0 : index
    %7 = vector.load %arg1[%6, %c0] : memref<16x128xf32, #tpu.memory_space<vmem>>, vector<16x128xf32>
    %8 = arith.mulf %7, %7 : vector<16x128xf32>
    %9 = vector.shape_cast %8 : vector<16x128xf32> to vector<2x8x128xf32>
    %cst_2 = arith.constant dense<0.000000e+00> : vector<8x128xf32>
    %10 = vector.multi_reduction <add>, %9, %cst_2 [0] : vector<2x8x128xf32> to vector<8x128xf32>
    %11 = arith.addf %3, %10 : vector<8x128xf32>
    %c1_i32 = arith.constant 1 : i32
    %c0_3 = arith.constant 0 : index
    %c0_4 = arith.constant 0 : index
    %12 = vector.load %arg2[%c0_3, %c0_4] : memref<8x128xf32, #tpu.memory_space<vmem>>, vector<8x128xf32>
    %13 = arith.addf %12, %11 : vector<8x128xf32>
    %c0_5 = arith.constant 0 : index
    %c0_6 = arith.constant 0 : index
    %14 = vector.load %arg2[%c0_5, %c0_6] : memref<8x128xf32, #tpu.memory_space<vmem>>, vector<8x128xf32>
    tpu.vector_store %arg2[%c0_5, %c0_6], %13 {strides = array<i32>} : memref<8x128xf32, #tpu.memory_space<vmem>>, vector<8x128xf32>,
    return
  }
  func.func @transform_0(%arg0: i32) -> (i32, i32) {
    %c0_i32 = arith.constant 0 : i32
    %c0_i32_0 = arith.constant 0 : i32
    return %arg0, %c0_i32 : i32, i32
  }
  func.func @transform_1(%arg0: i32) -> (i32, i32) {
    %c0_i32 = arith.constant 0 : i32
    %c0_i32_0 = arith.constant 0 : i32
    %c0_i32_1 = arith.constant 0 : i32
    return %c0_i32, %c0_i32_0 : i32, i32
  }
}

</mosaic_0001>

<bundles_post_ra>
// kernel: tpu_custom_call.1
= control target key start
LH: loop header
LB: loop body
LE: loop exit
PB: predicated region body
PF: predicated region fallthrough
CT: control target
= control target key end

     0   :  { %6 = vsyncpa [#allocation3], 0  ;;  %s121_s0 = inlined_call_operand.hbm [shape: f32[16,128], index: 0, kind: input, shape index: {}]   ;;  %s122_s1 = inlined_call_operand.hbm [shape: f32[8,128], index: 1, kind: output, shape index: {}]  }
   0x1   :  { %7 = vsyncpa [#allocation4], 0  ;;  %s101_s6 = smov [#allocation2]  }
   0x2   :  { %s13_s7 = sshll.u32 %s101_s6, 4  ;;  %s14_s7 = int_to_ptr.vmem [resolvable:$true] %s13_s7 }
   0x3   :  { %s65_s8 = scalar_lea.vmem %s14_s7, 256  ;;  %p70_p1 = scmp.lt.s32.totalorder %s14_s7, %s14_s7 }
   0x4   :  { %p66_p0 = scmp.ne.s32.totalorder %s14_s7, %s65_s8  ;;  %p71_p2 = scmp.lt.s32.totalorder %s65_s8, %s65_s8 }
   0x6   :  { %p72_p3 = por %p71_p2, %p70_p1 }
   0x8   :  { %p73_p4 = pnand %p72_p3, %p66_p0 }
   0xa   :  { %76 = shalt.err (!%p73_p4)
}
   0xb   :  { %s102_s9 = smov 128   ;;  %s103_s10 = smov 8  }
   0xc   :  { %19 = dma.hbm_to_vmem [thread:$0]  %s121_s0, 256, %s14_s7, [#allocation3], %s102_s9, %s102_s9, %s103_s10  }
   0xd   :  { %97 = dma.done.wait [#allocation3], 256  }
   0xe   :  { %98 = vsyncadd [#allocation3], 4294967040  ;;  %v28_v0 = vld [vmem:[#allocation2] sm:$0xff]  ;;  %v29_v1 = vld [vmem:[#allocation2 + $0x8] sm:$0xff]  ;;  %s104_s13 = smov [#allocation5]  }
   0xf   :  { %v30_v2 = vmul.f32 %v28_v0, %v28_v0  ;;  %v31_v3 = vmul.f32 %v29_v1, %v29_v1  ;;  %s43_s14 = sshll.u32 %s104_s13, 4  ;;  %s44_s14 = int_to_ptr.vmem [resolvable:$true] %s43_s14 }
  0x10   :  { %s77_s15 = scalar_lea.vmem %s44_s14, 128  ;;  %p82_p6 = scmp.lt.s32.totalorder %s44_s14, %s44_s14 }
  0x11   :  { %v32_v4 = vadd.f32 %v31_v3, %v30_v2  ;;  %p78_p5 = scmp.ne.s32.totalorder %s44_s14, %s77_s15  ;;  %p83_p7 = scmp.lt.s32.totalorder %s77_s15, %s77_s15 }
  0x13   :  { %36 = vst [vmem:[#allocation5] sm:$0xff] %v32_v4  ;;  %p84_p8 = por %p83_p7, %p82_p6 }
  0x15   :  { %p85_p9 = pnand %p84_p8, %p78_p5 }
  0x17   :  { %88 = shalt.err (!%p85_p9)
}
  0x18   :  { %46 = dma.vmem_to_hbm [thread:$0]  %s44_s14, 128, %s122_s1, [#allocation4]  }
  0x19   :  { %99 = dma.done.wait [#allocation4], 128  }
  0x1a   :  { %100 = vsyncadd [#allocation4], 4294967168 }
  0x1b   :  { %50 = vsyncpa [#allocation3], 1 }
  0x1c   :  { %51 = vsyncpa [#allocation4], 1 }

</bundles_post_ra>
